<compile_context>
chip_gen: v7x
topology: tpu7x:2x2x1
jax: 0.10.0
libtpu: 0.0.40
codegen_flags: <defaults>
</compile_context>

<pallas_src>
import jax
import jax.numpy as jnp
from jax import lax
from jax.experimental import pallas as pl
from jax.experimental.pallas import tpu as pltpu


def relu_conv1x1_kernel(x_ref, w_ref, o_ref):
    # x_ref: (Cin, M) f32   w_ref: (Cout, Cin) bf16   o_ref: (Cout, M) f32
    x = jnp.maximum(x_ref[...], 0.0).astype(jnp.bfloat16)   # ReLU (VPU) + bf16 cast
    o_ref[...] = lax.dot_general(                            # 1x1 conv == matmul (MXU)
        w_ref[...], x,
        dimension_numbers=(((1,), (0,)), ((), ())),           # contract Cin
        preferred_element_type=jnp.float32,                    # f32 accumulate
    ).astype(o_ref.dtype)


def relu_conv1x1(x_nchw, w_oihw):
    """x_nchw: [1, Cin, H, W] float32; w_oihw: [Cout, Cin, 1, 1] float32."""
    N, Cin, H, W = x_nchw.shape
    Cout = w_oihw.shape[0]
    assert N == 1, "kernel is specialized for the module's batch=1 shape"

    M = H * W
    # Free reshapes — no HBM-touching transposes.
    x_2d = x_nchw.reshape(Cin, M)                              # [Cin, M] f32
    w_2d = w_oihw.reshape(Cout, Cin).astype(jnp.bfloat16)      # [Cout, Cin] bf16

    out_2d = pl.pallas_call(
        relu_conv1x1_kernel,
        out_shape=jax.ShapeDtypeStruct((Cout, M), jnp.float32),
        in_specs=[
            pl.BlockSpec(memory_space=pltpu.MemorySpace.VMEM),
            pl.BlockSpec(memory_space=pltpu.MemorySpace.VMEM),
        ],
        out_specs=pl.BlockSpec(memory_space=pltpu.MemorySpace.VMEM),
        cost_estimate=pl.CostEstimate(
            flops=2 * M * Cin * Cout,
            bytes_accessed=4 * (Cin * M + Cout * M) + 2 * (Cout * Cin),
            transcendentals=0,
        ),
    )(x_2d, w_2d)

    return out_2d.reshape(N, Cout, H, W)   # free reshape back to NCHW


if __name__ == "__main__":
    key = jax.random.PRNGKey(0)
    kx, kw = jax.random.split(key)

    N, Cin, H, W = 1, 1056, 7, 7
    Cout = 128

    x = jax.random.normal(kx, (N, Cin, H, W), dtype=jnp.float32)
    # Deterministic kaiming-ish init for the 1x1 conv weight (bias=False).
    w = jax.random.normal(kw, (Cout, Cin, 1, 1), dtype=jnp.float32) * (2.0 / Cin) ** 0.5

    out = relu_conv1x1(x, w)
    out = jax.block_until_ready(out)

    # Reference check in plain JAX (f32).  Tolerance loosened for bf16 operands
    # with f32 accumulation.
    ref = jnp.einsum("nchw,oc->nohw", jnp.maximum(x, 0.0), w.reshape(Cout, Cin))
    assert out.shape == (N, Cout, H, W)
    assert jnp.allclose(out, ref, atol=5e-2, rtol=2e-2), float(
        jnp.max(jnp.abs(out - ref))
    )

    print("KERNEL_OK")
</pallas_src>

<mosaic_0001>
module attributes {stable_mosaic.version = 11 : i64} {
  func.func @relu_conv1x1_kernel(%arg0: memref<1056x49xf32, #tpu.memory_space<vmem>>, %arg1: memref<128x1056xbf16, #tpu.memory_space<vmem>>, %arg2: memref<128x49xf32, #tpu.memory_space<vmem>>) attributes {dimension_semantics = [], scalar_prefetch = 0 : i64, scratch_operands = 0 : i64, tpu.core_type = #tpu.core_type<tc>} {
    %c0 = arith.constant 0 : index
    %c0_0 = arith.constant 0 : index
    %0 = vector.load %arg0[%c0, %c0_0] : memref<1056x49xf32, #tpu.memory_space<vmem>>, vector<1056x49xf32>
    %cst = arith.constant 0.000000e+00 : f32
    %1 = vector.broadcast %cst : f32 to vector<1056x49xf32>
    %2 = arith.maximumf %0, %1 : vector<1056x49xf32>
    %3 = arith.truncf %2 : vector<1056x49xf32> to vector<1056x49xbf16>
    %c0_1 = arith.constant 0 : index
    %c0_2 = arith.constant 0 : index
    %4 = vector.load %arg1[%c0_1, %c0_2] : memref<128x1056xbf16, #tpu.memory_space<vmem>>, vector<128x1056xbf16>
    %cst_3 = arith.constant dense<0.000000e+00> : vector<128x49xf32>
    %5 = tpu.matmul %4, %3, %cst_3 {dimension_numbers = #tpu.dot_dimension_numbers<[1], [0], [0], [1], [0, 0, 1, 1], [], []>} : vector<128x1056xbf16>, vector<1056x49xbf16>, vector<128x49xf32> -> vector<128x49xf32>
    %c0_4 = arith.constant 0 : index
    %c0_5 = arith.constant 0 : index
    %6 = vector.load %arg2[%c0_4, %c0_5] : memref<128x49xf32, #tpu.memory_space<vmem>>, vector<128x49xf32>
    tpu.vector_store %arg2[%c0_4, %c0_5], %5 {strides = array<i32>} : memref<128x49xf32, #tpu.memory_space<vmem>>, vector<128x49xf32>,
    return
  }
}

</mosaic_0001>

<bundles_post_ra>
// kernel: tpu_custom_call.1
= control target key start
LH: loop header
LB: loop body
LE: loop exit
PB: predicated region body
PF: predicated region fallthrough
CT: control target
= control target key end

     0   :  { %vm782_vm0 = vcmask 261120   ;;  %vm1292_vm1 = vcmask 400384   ;;  %s2561_s0 = inlined_call_operand.vmem [shape: f32[1056,49], index: 0, kind: input, shape index: {}]   ;;  %s2562_s1 = inlined_call_operand.vmem [shape: bf16[128,1056], index: 1, kind: input, shape index: {}]   ;;  %s2563_s2 = inlined_call_operand.vmem [shape: f32[128,49], index: 2, kind: output, shape index: {}]  }
   0x1   :  { %v28_v0 = vld [vmem:[%s2561_s0 + $0x80] sm:$0xff]  ;;  %v29_v1 = vld [vmem:[%s2561_s0 + $0x88] sm:$0xff]  ;;  %v30_v14 = vld [vmem:[%s2561_s0 + $0x90] sm:$0xff] }
   0x2   :  { %v60_v2 = vld [vmem:[%s2561_s0 + $0x180] sm:$0xff]  ;;  %v160_v3 = vmax.f32 %v28_v0, 0.0  ;;  %v161_v4 = vmax.f32 %v29_v1, 0.0  ;;  %v61_v5 = vld [vmem:[%s2561_s0 + $0x188] sm:$0xff]  ;;  %v31_v18 = vld [vmem:[%s2561_s0 + $0x98] sm:$0xff]  ;;  %v162_v19 = vmax.f32 %v30_v14, 0.0 }
   0x3   :  { %v192_v6 = vmax.f32 %v60_v2, 0.0  ;;  %v12_v7 = vld [vmem:[%s2561_s0] sm:$0xff]  ;;  %v13_v8 = vld [vmem:[%s2561_s0 + $0x8] sm:$0xff]  ;;  %v193_v9 = vmax.f32 %v61_v5, 0.0  ;;  %v62_v20 = vld [vmem:[%s2561_s0 + $0x190] sm:$0xff]  ;;  %v163_v24 = vmax.f32 %v31_v18, 0.0 }
   0x4   :  { %v144_v10 = vmax.f32 %v12_v7, 0.0  ;;  %v145_v11 = vmax.f32 %v13_v8, 0.0  ;;  %v44_v12 = vld [vmem:[%s2561_s0 + $0x100] sm:$0xff]  ;;  %v45_v13 = vld [vmem:[%s2561_s0 + $0x108] sm:$0xff]  ;;  %v284_v15 = vpack.c.bf16 %v161_v4, %v160_v3  ;;  %v63_v21 = vld [vmem:[%s2561_s0 + $0x198] sm:$0xff]  ;;  %v194_v25 = vmax.f32 %v62_v20, 0.0 }
   0x5   :  { %v176_v16 = vmax.f32 %v44_v12, 0.0  ;;  %v177_v17 = vmax.f32 %v45_v13, 0.0  ;;  %v300_v22 = vpack.c.bf16 %v193_v9, %v192_v6  ;;  %v14_v26 = vld [vmem:[%s2561_s0 + $0x10] sm:$0xff]  ;;  %v15_v27 = vld [vmem:[%s2561_s0 + $0x18] sm:$0xff]  ;;  %v195_v30 = vmax.f32 %v63_v21, 0.0  ;;  %v32_v34 = vld [vmem:[%s2561_s0 + $0xa0] sm:$0xff] }
   0x6   :  { %v276_v23 = vpack.c.bf16 %v145_v11, %v144_v10  ;;  %v46_v28 = vld [vmem:[%s2561_s0 + $0x110] sm:$0xff]  ;;  %1393 = vmatprep.subr.bf16.mxu0 %v284_v15  ;;  %v146_v31 = vmax.f32 %v14_v26, 0.0  ;;  %v147_v32 = vmax.f32 %v15_v27, 0.0  ;;  %v47_v33 = vld [vmem:[%s2561_s0 + $0x118] sm:$0xff]  ;;  %v33_v35 = vld [vmem:[%s2561_s0 + $0xa8] sm:$0xff]  ;;  %v285_v36 = vpack.c.bf16 %v163_v24, %v162_v19 }
   0x7   :  { %v292_v29 = vpack.c.bf16 %v177_v17, %v176_v16  ;;  %1457 = vmatprep.subr.bf16.mxu1 %v300_v22  ;;  %v178_v37 = vmax.f32 %v46_v28, 0.0  ;;  %v179_v38 = vmax.f32 %v47_v33, 0.0  ;;  %v164_v39 = vmax.f32 %v32_v34, 0.0  ;;  %v64_v40 = vld [vmem:[%s2561_s0 + $0x1a0] sm:$0xff]  ;;  %v65_v41 = vld [vmem:[%s2561_s0 + $0x1a8] sm:$0xff]  ;;  %v34_v54 = vld [vmem:[%s2561_s0 + $0xb0] sm:$0xff] }
   0x8   :  { %1394 = vmatpush3.bf16.msra.mxu0 %v276_v23  ;;  %v16_v42 = vld [vmem:[%s2561_s0 + $0x20] sm:$0xff]  ;;  %v301_v43 = vpack.c.bf16 %v195_v30, %v194_v25  ;;  %v277_v44 = vpack.c.bf16 %v147_v32, %v146_v31  ;;  %v165_v45 = vmax.f32 %v33_v35, 0.0  ;;  %v196_v46 = vmax.f32 %v64_v40, 0.0  ;;  %v17_v47 = vld [vmem:[%s2561_s0 + $0x28] sm:$0xff]  ;;  %v35_v55 = vld [vmem:[%s2561_s0 + $0xb8] sm:$0xff] }
   0x9   :  { %1458 = vmatpush3.bf16.msra.mxu1 %v292_v29  ;;  %v48_v48 = vld [vmem:[%s2561_s0 + $0x120] sm:$0xff]  ;;  %v49_v49 = vld [vmem:[%s2561_s0 + $0x128] sm:$0xff]  ;;  %1395 = vmatprep.subr.bf16.mxu0 %v285_v36  ;;  %v293_v50 = vpack.c.bf16 %v179_v38, %v178_v37  ;;  %v197_v51 = vmax.f32 %v65_v41, 0.0  ;;  %v148_v52 = vmax.f32 %v16_v42, 0.0  ;;  %v149_v53 = vmax.f32 %v17_v47, 0.0  ;;  %v66_v56 = vld [vmem:[%s2561_s0 + $0x1b0] sm:$0xff] }
   0xa   :  { %1459 = vmatprep.subr.bf16.mxu1 %v301_v43  ;;  %v286_v57 = vpack.c.bf16 %v165_v45, %v164_v39  ;;  %v180_v58 = vmax.f32 %v48_v48, 0.0  ;;  %v181_v59 = vmax.f32 %v49_v49, 0.0  ;;  %v166_v60 = vmax.f32 %v34_v54, 0.0  ;;  %v67_v61 = vld [vmem:[%s2561_s0 + $0x1b8] sm:$0xff]  ;;  %v18_v62 = vld [vmem:[%s2561_s0 + $0x30] sm:$0xff]  ;;  %v36_v6 = vld [vmem:[%s2561_s0 + $0xc0] sm:$0xff] }
   0xb   :  { %v19_v63 = vld [vmem:[%s2561_s0 + $0x38] sm:$0xff]  ;;  %v302_v0 = vpack.c.bf16 %v197_v51, %v196_v46  ;;  %v278_v1 = vpack.c.bf16 %v149_v53, %v148_v52  ;;  %v167_v2 = vmax.f32 %v35_v55, 0.0  ;;  %v198_v3 = vmax.f32 %v66_v56, 0.0  ;;  %v50_v4 = vld [vmem:[%s2561_s0 + $0x130] sm:$0xff]  ;;  %v37_v11 = vld [vmem:[%s2561_s0 + $0xc8] sm:$0xff] }
   0xc   :  { %1396 = vmatpush3.bf16.msra.mxu0 %v277_v44  ;;  %v51_v5 = vld [vmem:[%s2561_s0 + $0x138] sm:$0xff]  ;;  %v294_v7 = vpack.c.bf16 %v181_v59, %v180_v58  ;;  %v199_v8 = vmax.f32 %v67_v61, 0.0  ;;  %v150_v9 = vmax.f32 %v18_v62, 0.0  ;;  %v151_v10 = vmax.f32 %v19_v63, 0.0  ;;  %v68_v12 = vld [vmem:[%s2561_s0 + $0x1c0] sm:$0xff]  ;;  %v69_v13 = vld [vmem:[%s2561_s0 + $0x1c8] sm:$0xff] }
   0xd   :  { %1460 = vmatpush3.bf16.msra.mxu1 %v293_v50  ;;  %1397 = vmatprep.subr.bf16.mxu0 %v286_v57  ;;  %v287_v14 = vpack.c.bf16 %v167_v2, %v166_v60  ;;  %v182_v15 = vmax.f32 %v50_v4, 0.0  ;;  %v183_v16 = vmax.f32 %v51_v5, 0.0  ;;  %v168_v17 = vmax.f32 %v36_v6, 0.0  ;;  %v20_v18 = vld [vmem:[%s2561_s0 + $0x40] sm:$0xff]  ;;  %v21_v19 = vld [vmem:[%s2561_s0 + $0x48] sm:$0xff]  ;;  %v38_v26 = vld [vmem:[%s2561_s0 + $0xd0] sm:$0xff] }
   0xe   :  { %1461 = vmatprep.subr.bf16.mxu1 %v302_v0  ;;  %v52_v20 = vld [vmem:[%s2561_s0 + $0x140] sm:$0xff]  ;;  %v303_v21 = vpack.c.bf16 %v199_v8, %v198_v3  ;;  %v279_v22 = vpack.c.bf16 %v151_v10, %v150_v9  ;;  %v169_v23 = vmax.f32 %v37_v11, 0.0  ;;  %v200_v24 = vmax.f32 %v68_v12, 0.0  ;;  %v53_v25 = vld [vmem:[%s2561_s0 + $0x148] sm:$0xff]  ;;  %v39_v27 = vld [vmem:[%s2561_s0 + $0xd8] sm:$0xff] }
   0xf   :  { %v295_v28 = vpack.c.bf16 %v183_v16, %v182_v15  ;;  %v201_v29 = vmax.f32 %v69_v13, 0.0  ;;  %v152_v30 = vmax.f32 %v20_v18, 0.0  ;;  %v153_v31 = vmax.f32 %v21_v19, 0.0  ;;  %v70_v32 = vld [vmem:[%s2561_s0 + $0x1d0] sm:$0xff]  ;;  %v71_v33 = vld [vmem:[%s2561_s0 + $0x1d8] sm:$0xff]  ;;  %v40_v45 = vld [vmem:[%s2561_s0 + $0xe0] sm:$0xff] }
  0x10   :  { %1398 = vmatpush3.bf16.msra.mxu0 %v278_v1  ;;  %v288_v34 = vpack.c.bf16 %v169_v23, %v168_v17  ;;  %v184_v35 = vmax.f32 %v52_v20, 0.0  ;;  %v185_v36 = vmax.f32 %v53_v25, 0.0  ;;  %v170_v37 = vmax.f32 %v38_v26, 0.0  ;;  %v22_v38 = vld [vmem:[%s2561_s0 + $0x50] sm:$0xff]  ;;  %v23_v39 = vld [vmem:[%s2561_s0 + $0x58] sm:$0xff]  ;;  %v41_v46 = vld [vmem:[%s2561_s0 + $0xe8] sm:$0xff] }
  0x11   :  { %1462 = vmatpush3.bf16.msra.mxu1 %v294_v7  ;;  %1399 = vmatprep.subr.bf16.mxu0 %v287_v14  ;;  %v54_v40 = vld [vmem:[%s2561_s0 + $0x150] sm:$0xff]  ;;  %v304_v41 = vpack.c.bf16 %v201_v29, %v200_v24  ;;  %v171_v42 = vmax.f32 %v39_v27, 0.0  ;;  %v202_v43 = vmax.f32 %v70_v32, 0.0  ;;  %v55_v44 = vld [vmem:[%s2561_s0 + $0x158] sm:$0xff]  ;;  %v280_v47 = vpack.c.bf16 %v153_v31, %v152_v30  ;;  %v72_v49 = vld [vmem:[%s2561_s0 + $0x1e0] sm:$0xff] }
  0x12   :  { %1463 = vmatprep.subr.bf16.mxu1 %v303_v21  ;;  %v203_v48 = vmax.f32 %v71_v33, 0.0  ;;  %v73_v50 = vld [vmem:[%s2561_s0 + $0x1e8] sm:$0xff]  ;;  %v296_v51 = vpack.c.bf16 %v185_v36, %v184_v35  ;;  %v154_v53 = vmax.f32 %v22_v38, 0.0  ;;  %v155_v54 = vmax.f32 %v23_v39, 0.0  ;;  %v24_v55 = vld [vmem:[%s2561_s0 + $0x60] sm:$0xff]  ;;  %v42_v2 = vld [vmem:[%s2561_s0 + $0xf0] sm:$0xff] }
  0x13   :  { %v289_v52 = vpack.c.bf16 %v171_v42, %v170_v37  ;;  %v25_v56 = vld [vmem:[%s2561_s0 + $0x68] sm:$0xff]  ;;  %v186_v57 = vmax.f32 %v54_v40, 0.0  ;;  %v187_v58 = vmax.f32 %v55_v44, 0.0  ;;  %v172_v59 = vmax.f32 %v40_v45, 0.0  ;;  %v56_v61 = vld [vmem:[%s2561_s0 + $0x160] sm:$0xff]  ;;  %v43_v3 = vld [vmem:[%s2561_s0 + $0xf8] sm:$0xff] }
  0x14   :  { %1400 = vmatpush3.bf16.msra.mxu0 %v279_v22  ;;  %v173_v60 = vmax.f32 %v41_v46, 0.0  ;;  %v57_v62 = vld [vmem:[%s2561_s0 + $0x168] sm:$0xff]  ;;  %v305_v63 = vpack.c.bf16 %v203_v48, %v202_v43  ;;  %v204_v0 = vmax.f32 %v72_v49, 0.0  ;;  %v205_v1 = vmax.f32 %v73_v50, 0.0  ;;  %v74_v4 = vld [vmem:[%s2561_s0 + $0x1f0] sm:$0xff]  ;;  %v75_v7 = vld [vmem:[%s2561_s0 + $0x1f8] sm:$0xff] }
  0x15   :  { %1464 = vmatpush3.bf16.msra.mxu1 %v295_v28  ;;  %1401 = vmatprep.subr.bf16.mxu0 %v288_v34  ;;  %v156_v5 = vmax.f32 %v24_v55, 0.0  ;;  %v157_v6 = vmax.f32 %v25_v56, 0.0  ;;  %v281_v8 = vpack.c.bf16 %v155_v54, %v154_v53  ;;  %v188_v9 = vmax.f32 %v56_v61, 0.0  ;;  %v26_v11 = vld [vmem:[%s2561_s0 + $0x70] sm:$0xff]  ;;  %v27_v12 = vld [vmem:[%s2561_s0 + $0x78] sm:$0xff]  ;;  %v92_v24 = vld [vmem:[%s2561_s0 + $0x280] sm:$0xff] }
  0x16   :  { %1465 = vmatprep.subr.bf16.mxu1 %v304_v41  ;;  %v189_v10 = vmax.f32 %v57_v62, 0.0  ;;  %v1685_v13 = vld [vmem:[%s2562_s1 + $0x4] ss:$36 sps:$4 sm:$0xff]   ;;  %v297_v14 = vpack.c.bf16 %v187_v58, %v186_v57  ;;  %v290_v15 = vpack.c.bf16 %v173_v60, %v172_v59  ;;  %v174_v16 = vmax.f32 %v42_v2, 0.0  ;;  %v58_v18 = vld [vmem:[%s2561_s0 + $0x170] sm:$0xff]  ;;  %v59_v22 = vld [vmem:[%s2561_s0 + $0x178] sm:$0xff] }
  0x17   :  { %v175_v17 = vmax.f32 %v43_v3, 0.0  ;;  %v306_v19 = vpack.c.bf16 %v205_v1, %v204_v0  ;;  %v206_v20 = vmax.f32 %v74_v4, 0.0  ;;  %v207_v21 = vmax.f32 %v75_v7, 0.0  ;;  %839 = vmatprep.mubr.bf16.mxu0 %v1685_v13  ;;  %v1688_v23 = vld [vmem:[%s2562_s1 + $0xc] ss:$36 sps:$4 sm:$0xff]   ;;  %v124_v27 = vld [vmem:[%s2561_s0 + $0x380] sm:$0xff] }
  0x18   :  { %1402 = vmatpush3.bf16.msra.mxu0 %v280_v47  ;;  %v282_v25 = vpack.c.bf16 %v157_v6, %v156_v5  ;;  %v93_v26 = vld [vmem:[%s2561_s0 + $0x288] sm:$0xff]  ;;  %v298_v29 = vpack.c.bf16 %v189_v10, %v188_v9  ;;  %v158_v30 = vmax.f32 %v26_v11, 0.0  ;;  %v159_v31 = vmax.f32 %v27_v12, 0.0  ;;  %936 = vmatprep.mubr.bf16.mxu1 %v1688_v23  ;;  %v76_v33 = vld [vmem:[%s2561_s0 + $0x200] sm:$0xff]  ;;  %v94_v47 = vld [vmem:[%s2561_s0 + $0x290] sm:$0xff] }
  0x19   :  { %1466 = vmatpush3.bf16.msra.mxu1 %v296_v51  ;;  %1403 = vmatprep.subr.bf16.mxu0 %v289_v52  ;;  %v125_v28 = vld [vmem:[%s2561_s0 + $0x388] sm:$0xff]  ;;  %v190_v32 = vmax.f32 %v58_v18, 0.0  ;;  %v291_v35 = vpack.c.bf16 %v175_v17, %v174_v16  ;;  %v191_v36 = vmax.f32 %v59_v22, 0.0  ;;  %v224_v37 = vmax.f32 %v92_v24, 0.0  ;;  %v108_v39 = vld [vmem:[%s2561_s0 + $0x300] sm:$0xff]  ;;  %v95_v48 = vld [vmem:[%s2561_s0 + $0x298] sm:$0xff] }
  0x1a   :  { %1467 = vmatprep.subr.bf16.mxu1 %v305_v63  ;;  %v77_v34 = vld [vmem:[%s2561_s0 + $0x208] sm:$0xff]  ;;  %v225_v38 = vmax.f32 %v93_v26, 0.0  ;;  %v307_v40 = vpack.c.bf16 %v207_v21, %v206_v20  ;;  %v256_v41 = vmax.f32 %v124_v27, 0.0  ;;  %v257_v42 = vmax.f32 %v125_v28, 0.0  ;;  %v126_v49 = vld [vmem:[%s2561_s0 + $0x390] sm:$0xff]  ;;  %v127_v55 = vld [vmem:[%s2561_s0 + $0x398] sm:$0xff] }
  0x1b   :  { %v109_v43 = vld [vmem:[%s2561_s0 + $0x308] sm:$0xff]  ;;  %v283_v44 = vpack.c.bf16 %v159_v31, %v158_v30  ;;  %v208_v45 = vmax.f32 %v76_v33, 0.0  ;;  %v209_v46 = vmax.f32 %v77_v34, 0.0  ;;  %v299_v50 = vpack.c.bf16 %v191_v36, %v190_v32  ;;  %v1683_v51 = vld [vmem:[%s2562_s1] ss:$36 sps:$4 sm:$0xff]   ;;  %v78_v56 = vld [vmem:[%s2561_s0 + $0x210] sm:$0xff] }
  0x1c   :  { %1404 = vmatpush3.bf16.msra.mxu0 %v281_v8  ;;  %v316_v52 = vpack.c.bf16 %v225_v38, %v224_v37  ;;  %v240_v53 = vmax.f32 %v108_v39, 0.0  ;;  %v241_v54 = vmax.f32 %v109_v43, 0.0  ;;  %v79_v57 = vld [vmem:[%s2561_s0 + $0x218] sm:$0xff]  ;;  %v332_v58 = vpack.c.bf16 %v257_v42, %v256_v41  ;;  %v110_v61 = vld [vmem:[%s2561_s0 + $0x310] sm:$0xff]  ;;  %v1686_v63 = vld [vmem:[%s2562_s1 + $0x8] ss:$36 sps:$4 sm:$0xff]  }
  0x1d   :  { %1468 = vmatpush3.bf16.msra.mxu1 %v297_v14  ;;  %1405 = vmatprep.subr.bf16.mxu0 %v290_v15  ;;  %v226_v59 = vmax.f32 %v94_v47, 0.0  ;;  %v227_v60 = vmax.f32 %v95_v48, 0.0  ;;  %v111_v62 = vld [vmem:[%s2561_s0 + $0x318] sm:$0xff]  ;;  %v258_v0 = vmax.f32 %v126_v49, 0.0  ;;  %v259_v1 = vmax.f32 %v127_v55, 0.0  ;;  %v96_v10 = vld [vmem:[%s2561_s0 + $0x2a0] sm:$0xff] }
  0x1e   :  { %1469 = vmatprep.subr.bf16.mxu1 %v306_v19  ;;  %v308_v2 = vpack.c.bf16 %v209_v46, %v208_v45  ;;  %v1689_v3 = vld [vmem:[%s2562_s1 + $0x4c] ss:$36 sps:$4 sm:$0xff]   ;;  %v210_v4 = vmax.f32 %v78_v56, 0.0  ;;  %v211_v5 = vmax.f32 %v79_v57, 0.0  ;;  %v324_v6 = vpack.c.bf16 %v241_v54, %v240_v53  ;;  %v1691_v7 = vld [vmem:[%s2562_s1 + $0x54] ss:$36 sps:$4 sm:$0xff]  }
  0x1f   :  { %v242_v8 = vmax.f32 %v110_v61, 0.0  ;;  %v243_v9 = vmax.f32 %v111_v62, 0.0  ;;  %v97_v11 = vld [vmem:[%s2561_s0 + $0x2a8] sm:$0xff]  ;;  %v317_v12 = vpack.c.bf16 %v227_v60, %v226_v59  ;;  %v228_v13 = vmax.f32 %v96_v10, 0.0  ;;  %v128_v15 = vld [vmem:[%s2561_s0 + $0x3a0] sm:$0xff]  ;;  %v99_v37 = vld [vmem:[%s2561_s0 + $0x2b8] sm:$0xff] }
  0x20   :  { %1406 = vmatpush3.bf16.msra.mxu0 %v282_v25  ;;  %v229_v14 = vmax.f32 %v97_v11, 0.0  ;;  %v129_v16 = vld [vmem:[%s2561_s0 + $0x3a8] sm:$0xff]  ;;  %v80_v17 = vld [vmem:[%s2561_s0 + $0x220] sm:$0xff]  ;;  %v333_v18 = vpack.c.bf16 %v259_v1, %v258_v0  ;;  %v260_v19 = vmax.f32 %v128_v15, 0.0  ;;  %v309_v24 = vpack.c.bf16 %v211_v5, %v210_v4  ;;  %v1694_v30 = vld [vmem:[%s2562_s1 + $0x50] ss:$36 sps:$4 sm:$0xff]  }
  0x21   :  { %1470 = vmatpush3.bf16.msra.mxu1 %v298_v29  ;;  %1407 = vmatprep.subr.bf16.mxu0 %v291_v35  ;;  %v261_v20 = vmax.f32 %v129_v16, 0.0  ;;  %v81_v21 = vld [vmem:[%s2561_s0 + $0x228] sm:$0xff]  ;;  %v112_v22 = vld [vmem:[%s2561_s0 + $0x320] sm:$0xff]  ;;  %v325_v26 = vpack.c.bf16 %v243_v9, %v242_v8  ;;  %v212_v28 = vmax.f32 %v80_v17, 0.0  ;;  %v1695_v31 = vld [vmem:[%s2562_s1 + $0x94] ss:$36 sps:$4 sm:$0xff]  }
  0x22   :  { %1471 = vmatprep.subr.bf16.mxu1 %v307_v40  ;;  %v113_v23 = vld [vmem:[%s2561_s0 + $0x328] sm:$0xff]  ;;  %v318_v27 = vpack.c.bf16 %v229_v14, %v228_v13  ;;  %v213_v29 = vmax.f32 %v81_v21, 0.0  ;;  %v244_v33 = vmax.f32 %v112_v22, 0.0  ;;  %v98_v35 = vld [vmem:[%s2561_s0 + $0x2b0] sm:$0xff]  ;;  %v1697_v36 = vld [vmem:[%s2562_s1 + $0x9c] ss:$36 sps:$4 sm:$0xff]  }
  0x23   :  { %v1693_v25 = vld [vmem:[%s2562_s1 + $0x48] ss:$36 sps:$4 sm:$0xff]   ;;  %v334_v32 = vpack.c.bf16 %v261_v20, %v260_v19  ;;  %v245_v34 = vmax.f32 %v113_v23, 0.0  ;;  %v230_v38 = vmax.f32 %v98_v35, 0.0  ;;  %v130_v39 = vld [vmem:[%s2561_s0 + $0x3b0] sm:$0xff]  ;;  %v131_v40 = vld [vmem:[%s2561_s0 + $0x3b8] sm:$0xff] }
  0x24   :  { %1408 = vmatpush3.bf16.msra.mxu0 %v283_v44  ;;  %v231_v41 = vmax.f32 %v99_v37, 0.0  ;;  %v262_v42 = vmax.f32 %v130_v39, 0.0  ;;  %v263_v43 = vmax.f32 %v131_v40, 0.0  ;;  %v82_v44 = vld [vmem:[%s2561_s0 + $0x230] sm:$0xff]  ;;  %v83_v45 = vld [vmem:[%s2561_s0 + $0x238] sm:$0xff]  ;;  %v310_v47 = vpack.c.bf16 %v213_v29, %v212_v28  ;;  %v100_v56 = vld [vmem:[%s2561_s0 + $0x2c0] sm:$0xff] }
  0x25   :  { %1472 = vmatpush3.bf16.msra.mxu1 %v299_v50  ;;  %1521 = vmatprep.subr.bf16.mxu0 %v316_v52  ;;  %v114_v46 = vld [vmem:[%s2561_s0 + $0x330] sm:$0xff]  ;;  %v214_v48 = vmax.f32 %v82_v44, 0.0  ;;  %v215_v49 = vmax.f32 %v83_v45, 0.0  ;;  %v115_v50 = vld [vmem:[%s2561_s0 + $0x338] sm:$0xff]  ;;  %v101_v57 = vld [vmem:[%s2561_s0 + $0x2c8] sm:$0xff]  ;;  %v232_v60 = vmax.f32 %v100_v56, 0.0 }
  0x26   :  { %1585 = vmatprep.subr.bf16.mxu1 %v332_v58  ;;  %v319_v52 = vpack.c.bf16 %v231_v41, %v230_v38  ;;  %v246_v53 = vmax.f32 %v114_v46, 0.0  ;;  %v247_v54 = vmax.f32 %v115_v50, 0.0  ;;  %v335_v55 = vpack.c.bf16 %v263_v43, %v262_v42  ;;  %v132_v58 = vld [vmem:[%s2561_s0 + $0x3c0] sm:$0xff]  ;;  %v133_v62 = vld [vmem:[%s2561_s0 + $0x3c8] sm:$0xff]  ;;  %v1699_v8 = vld [vmem:[%s2562_s1 + $0x90] ss:$36 sps:$4 sm:$0xff]  }
  0x27   :  { %840 = vmatmul.mubr.bf16.vlgmr.msra.gmra.mrb[0].mxu0 %v1683_v51  ;;  %v326_v51 = vpack.c.bf16 %v245_v34, %v244_v33  ;;  %v311_v59 = vpack.c.bf16 %v215_v49, %v214_v48  ;;  %v233_v61 = vmax.f32 %v101_v57, 0.0  ;;  %v84_v0 = vld [vmem:[%s2561_s0 + $0x240] sm:$0xff]  ;;  %v85_v1 = vld [vmem:[%s2561_s0 + $0x248] sm:$0xff]  ;;  %v102_v17 = vld [vmem:[%s2561_s0 + $0x2d0] sm:$0xff] }
  0x28   :  { %937 = vmatmul.mubr.bf16.vlgmr.msra.gmra.mrb[0].mxu1 %v1686_v63  ;;  %1522 = vmatpush3.bf16.msra.mxu0 %v308_v2  ;;  %v264_v63 = vmax.f32 %v132_v58, 0.0  ;;  %v327_v2 = vpack.c.bf16 %v247_v54, %v246_v53  ;;  %v216_v4 = vmax.f32 %v84_v0, 0.0  ;;  %v217_v5 = vmax.f32 %v85_v1, 0.0  ;;  %v1701_v13 = vld [vmem:[%s2562_s1 + $0xdc] ss:$36 sps:$4 sm:$0xff]   ;;  %v134_v22 = vld [vmem:[%s2561_s0 + $0x3d0] sm:$0xff] }
  0x29   :  { %1586 = vmatpush3.bf16.msra.mxu1 %v324_v6  ;;  %847 = vmatprep.mubr.bf16.mxu0 %v1689_v3  ;;  %v265_v3 = vmax.f32 %v133_v62, 0.0  ;;  %v116_v6 = vld [vmem:[%s2561_s0 + $0x340] sm:$0xff]  ;;  %v320_v9 = vpack.c.bf16 %v233_v61, %v232_v60  ;;  %v234_v20 = vmax.f32 %v102_v17, 0.0  ;;  %v135_v23 = vld [vmem:[%s2561_s0 + $0x3d8] sm:$0xff]  ;;  %v118_v29 = vld [vmem:[%s2561_s0 + $0x350] sm:$0xff] }
  0x2a   :  { %944 = vmatprep.mubr.bf16.mxu1 %v1691_v7  ;;  %1523 = vmatprep.subr.bf16.mxu0 %v317_v12  ;;  %v117_v7 = vld [vmem:[%s2561_s0 + $0x348] sm:$0xff]  ;;  %v248_v10 = vmax.f32 %v116_v6, 0.0  ;;  %v1700_v12 = vld [vmem:[%s2562_s1 + $0x98] ss:$36 sps:$4 sm:$0xff]   ;;  %v312_v16 = vpack.c.bf16 %v217_v5, %v216_v4  ;;  %v250_v33 = vmax.f32 %v118_v29, 0.0  ;;  %v104_v41 = vld [vmem:[%s2561_s0 + $0x2e0] sm:$0xff] }
  0x2b   :  { %1587 = vmatprep.subr.bf16.mxu1 %v333_v18  ;;  %v249_v11 = vmax.f32 %v117_v7, 0.0  ;;  %v336_v14 = vpack.c.bf16 %v265_v3, %v264_v63  ;;  %v1703_v15 = vld [vmem:[%s2562_s1 + $0xe4] ss:$36 sps:$4 sm:$0xff]   ;;  %v103_v18 = vld [vmem:[%s2561_s0 + $0x2d8] sm:$0xff]  ;;  %v1709_v42 = vld [vmem:[%s2562_s1 + $0x12c] ss:$36 sps:$4 sm:$0xff]  }
  0x2c   :  { %1524 = vmatpush3.bf16.msra.mxu0 %v309_v24  ;;  %v235_v21 = vmax.f32 %v103_v18, 0.0  ;;  %v86_v24 = vld [vmem:[%s2561_s0 + $0x250] sm:$0xff]  ;;  %v1705_v35 = vld [vmem:[%s2562_s1 + $0xd8] ss:$36 sps:$4 sm:$0xff]   ;;  %v1706_v37 = vld [vmem:[%s2562_s1 + $0xe0] ss:$36 sps:$4 sm:$0xff]  }
  0x2d   :  { %1588 = vmatpush3.bf16.msra.mxu1 %v325_v26  ;;  %1525 = vmatprep.subr.bf16.mxu0 %v318_v27  ;;  %v328_v19 = vpack.c.bf16 %v249_v11, %v248_v10  ;;  %v267_v26 = vmax.f32 %v135_v23, 0.0  ;;  %v87_v27 = vld [vmem:[%s2561_s0 + $0x258] sm:$0xff]  ;;  %v218_v28 = vmax.f32 %v86_v24, 0.0  ;;  %v1707_v38 = vld [vmem:[%s2562_s1 + $0x124] ss:$36 sps:$4 sm:$0xff]   ;;  %v236_v44 = vmax.f32 %v104_v41, 0.0 }
  0x2e   :  { %1589 = vmatprep.subr.bf16.mxu1 %v334_v32  ;;  %v219_v32 = vmax.f32 %v87_v27, 0.0  ;;  %v105_v43 = vld [vmem:[%s2561_s0 + $0x2e8] sm:$0xff]  ;;  %v136_v45 = vld [vmem:[%s2561_s0 + $0x3e0] sm:$0xff]  ;;  %v106_v62 = vld [vmem:[%s2561_s0 + $0x2f0] sm:$0xff] }
  0x2f   :  { %848 = vmatmul.mubr.bf16.gmra.mrb[4].mxu0 %v1693_v25  ;;  %v266_v25 = vmax.f32 %v134_v22, 0.0  ;;  %v137_v46 = vld [vmem:[%s2561_s0 + $0x3e8] sm:$0xff]  ;;  %v268_v48 = vmax.f32 %v136_v45, 0.0  ;;  %v88_v50 = vld [vmem:[%s2561_s0 + $0x260] sm:$0xff]  ;;  %v107_v63 = vld [vmem:[%s2561_s0 + $0x2f8] sm:$0xff]  ;;  %v238_v1 = vmax.f32 %v106_v62, 0.0 }
  0x30   :  { %945 = vmatmul.mubr.bf16.gmra.mrb[4].mxu1 %v1694_v30  ;;  %855 = vmatprep.mubr.bf16.mxu0 %v1695_v31  ;;  %v119_v30 = vld [vmem:[%s2561_s0 + $0x358] sm:$0xff]  ;;  %v321_v31 = vpack.c.bf16 %v235_v21, %v234_v20  ;;  %v313_v39 = vpack.c.bf16 %v219_v32, %v218_v28  ;;  %v269_v49 = vmax.f32 %v137_v46, 0.0  ;;  %v220_v53 = vmax.f32 %v88_v50, 0.0  ;;  %v138_v0 = vld [vmem:[%s2561_s0 + $0x3f0] sm:$0xff]  ;;  %v140_v22 = vld [vmem:[%s2561_s0 + $0x400] sm:$0xff] }
  0x31   :  { %952 = vmatprep.mubr.bf16.mxu1 %v1697_v36  ;;  %1526 = vmatpush3.bf16.msra.mxu0 %v310_v47  ;;  %v251_v34 = vmax.f32 %v119_v30, 0.0  ;;  %v337_v36 = vpack.c.bf16 %v267_v26, %v266_v25  ;;  %v237_v47 = vmax.f32 %v105_v43, 0.0  ;;  %v139_v3 = vld [vmem:[%s2561_s0 + $0x3f8] sm:$0xff]  ;;  %v270_v4 = vmax.f32 %v138_v0, 0.0  ;;  %v90_v5 = vld [vmem:[%s2561_s0 + $0x270] sm:$0xff]  ;;  %v141_v23 = vld [vmem:[%s2561_s0 + $0x408] sm:$0xff] }
  0x32   :  { %1590 = vmatpush3.bf16.msra.mxu1 %v326_v51  ;;  %1527 = vmatprep.subr.bf16.mxu0 %v319_v52  ;;  %v89_v51 = vld [vmem:[%s2561_s0 + $0x268] sm:$0xff]  ;;  %v120_v52 = vld [vmem:[%s2561_s0 + $0x360] sm:$0xff]  ;;  %v338_v58 = vpack.c.bf16 %v269_v49, %v268_v48  ;;  %v91_v6 = vld [vmem:[%s2561_s0 + $0x278] sm:$0xff]  ;;  %v271_v7 = vmax.f32 %v139_v3, 0.0  ;;  %v272_v24 = vmax.f32 %v140_v22, 0.0  ;;  %v273_v25 = vmax.f32 %v141_v23, 0.0 }
  0x33   :  { %1591 = vmatprep.subr.bf16.mxu1 %v335_v55  ;;  %v329_v40 = vpack.c.bf16 %v251_v34, %v250_v33  ;;  %v221_v54 = vmax.f32 %v89_v51, 0.0  ;;  %v121_v55 = vld [vmem:[%s2561_s0 + $0x368] sm:$0xff]  ;;  %v252_v56 = vmax.f32 %v120_v52, 0.0  ;;  %v322_v57 = vpack.c.bf16 %v237_v47, %v236_v44  ;;  %v122_v10 = vld [vmem:[%s2561_s0 + $0x370] sm:$0xff]  ;;  %v123_v11 = vld [vmem:[%s2561_s0 + $0x378] sm:$0xff] }
  0x34   :  { %v1713_v17 = vld [vmem:[%s2562_s1 + $0x16c] ss:$36 sps:$4 sm:$0xff]   ;;  %v339_v18 = vpack.c.bf16 %v271_v7, %v270_v4  ;;  %v1715_v20 = vld [vmem:[%s2562_s1 + $0x174] ss:$36 sps:$4 sm:$0xff]   ;;  %v340_v26 = vpack.c.bf16 %v273_v25, %v272_v24  ;;  %v1721_v30 = vld [vmem:[%s2562_s1 + $0x1bc] ss:$36 sps:$4 sm:$0xff]  }
  0x35   :  { %1528 = vmatpush3.bf16.msra.mxu0 %v311_v59  ;;  %v253_v59 = vmax.f32 %v121_v55, 0.0  ;;  %v314_v60 = vpack.c.bf16 %v221_v54, %v220_v53  ;;  %v1717_v27 = vld [vmem:[%s2562_s1 + $0x168] ss:$36 sps:$4 sm:$0xff]   ;;  %v1718_v28 = vld [vmem:[%s2562_s1 + $0x170] ss:$36 sps:$4 sm:$0xff]  }
  0x36   :  { %1592 = vmatpush3.bf16.msra.mxu1 %v327_v2  ;;  %1529 = vmatprep.subr.bf16.mxu0 %v320_v9  ;;  %v239_v2 = vmax.f32 %v107_v63, 0.0  ;;  %v223_v9 = vmax.f32 %v91_v6, 0.0  ;;  %v1719_v29 = vld [vmem:[%s2562_s1 + $0x1b4] ss:$36 sps:$4 sm:$0xff]   ;;  %v1725_v33 = vld [vmem:[%s2562_s1 + $0x1fc] ss:$36 sps:$4 sm:$0xff]  }
  0x37   :  { %856 = vmatmul.mubr.bf16.gmra.mrb[8].mxu0 %v1699_v8  ;;  %1593 = vmatprep.subr.bf16.mxu1 %v336_v14  ;;  %v330_v61 = vpack.c.bf16 %v253_v59, %v252_v56  ;;  %v222_v8 = vmax.f32 %v90_v5, 0.0  ;;  %v254_v14 = vmax.f32 %v122_v10, 0.0  ;;  %v1724_v32 = vld [vmem:[%s2562_s1 + $0x1b8] ss:$36 sps:$4 sm:$0xff]   ;;  %v1727_v34 = vld [vmem:[%s2562_s1 + $0x204] ss:$36 sps:$4 sm:$0xff]  }
  0x38   :  { %953 = vmatmul.mubr.bf16.gmra.mrb[8].mxu1 %v1700_v12  ;;  %863 = vmatprep.mubr.bf16.mxu0 %v1701_v13  ;;  %v1711_v12 = vld [vmem:[%s2562_s1 + $0x120] ss:$36 sps:$4 sm:$0xff]   ;;  %v323_v13 = vpack.c.bf16 %v239_v2, %v238_v1  ;;  %v1731_v43 = vld [vmem:[%s2562_s1 + $0x10] ss:$36 sps:$4 sm:$0xff]   ;;  %v1734_v44 = vld [vmem:[%s2562_s1 + $0x18] ss:$36 sps:$4 sm:$0xff]  }
  0x39   :  { %960 = vmatprep.mubr.bf16.mxu1 %v1703_v15  ;;  %1530 = vmatpush3.bf16.msra.mxu0 %v312_v16  ;;  %v255_v15 = vmax.f32 %v123_v11, 0.0  ;;  %v1712_v16 = vld [vmem:[%s2562_s1 + $0x128] ss:$36 sps:$4 sm:$0xff]   ;;  %v1737_v45 = vld [vmem:[%s2562_s1 + $0x5c] ss:$36 sps:$4 sm:$0xff]  }
  0x3a   :  { %1594 = vmatpush3.bf16.msra.mxu1 %v328_v19  ;;  %1531 = vmatprep.subr.bf16.mxu0 %v321_v31  ;;  %v315_v19 = vpack.c.bf16 %v223_v9, %v222_v8  ;;  %v1723_v31 = vld [vmem:[%s2562_s1 + $0x1b0] ss:$36 sps:$4 sm:$0xff]   ;;  %v1739_v46 = vld [vmem:[%s2562_s1 + $0x64] ss:$36 sps:$4 sm:$0xff]   ;;  %v1741_v48 = vld [vmem:[%s2562_s1 + $0x58] ss:$36 sps:$4 sm:$0xff]  }
  0x3b   :  { %1595 = vmatprep.subr.bf16.mxu1 %v337_v36  ;;  %v331_v21 = vpack.c.bf16 %v255_v15, %v254_v14  ;;  %v1730_v36 = vld [vmem:[%s2562_s1 + $0x200] ss:$36 sps:$4 sm:$0xff]   ;;  %v1745_v51 = vld [vmem:[%s2562_s1 + $0xac] ss:$36 sps:$4 sm:$0xff]   ;;  %v1751_v55 = vld [vmem:[%s2562_s1 + $0xf4] ss:$36 sps:$4 sm:$0xff]  }
  0x3c   :  { %v1742_v49 = vld [vmem:[%s2562_s1 + $0x60] ss:$36 sps:$4 sm:$0xff]   ;;  %v1748_v53 = vld [vmem:[%s2562_s1 + $0xa8] ss:$36 sps:$4 sm:$0xff]   ;;  %v1765_v0 = vld [vmem:[%s2562_s1 + $0x178] ss:$36 sps:$4 sm:$0xff]  }
  0x3d   :  { %1532 = vmatpush3.bf16.msra.mxu0 %v313_v39  ;;  %v142_v39 = vld [vmem:[%s2561_s0 + $0x410] sm:$0xff]  ;;  %v1743_v50 = vld [vmem:[%s2562_s1 + $0xa4] ss:$36 sps:$4 sm:$0xff]   ;;  %v1757_v59 = vld [vmem:[%s2562_s1 + $0x13c] ss:$36 sps:$4 sm:$0xff]  }
  0x3e   :  { %1596 = vmatpush3.bf16.msra.mxu1 %v329_v40  ;;  %1533 = vmatprep.subr.bf16.mxu0 %v322_v57  ;;  %v143_v40 = vld [vmem:[%s2561_s0 + $0x418] sm:$0xff]  ;;  %v274_v41 = vmax.f32 %v142_v39, 0.0  ;;  %v1747_v52 = vld [vmem:[%s2562_s1 + $0xa0] ss:$36 sps:$4 sm:$0xff]   ;;  %v1749_v54 = vld [vmem:[%s2562_s1 + $0xec] ss:$36 sps:$4 sm:$0xff]  }
  0x3f   :  { %864 = vmatmul.mubr.bf16.gmra.mrb[12].mxu0 %v1705_v35  ;;  %1597 = vmatprep.subr.bf16.mxu1 %v338_v58  ;;  %v1729_v35 = vld [vmem:[%s2562_s1 + $0x1f8] ss:$36 sps:$4 sm:$0xff]   ;;  %v1753_v56 = vld [vmem:[%s2562_s1 + $0xe8] ss:$36 sps:$4 sm:$0xff]   ;;  %v1754_v57 = vld [vmem:[%s2562_s1 + $0xf0] ss:$36 sps:$4 sm:$0xff]  }
  0x40   :  { %961 = vmatmul.mubr.bf16.gmra.mrb[12].mxu1 %v1706_v37  ;;  %871 = vmatprep.mubr.bf16.mxu0 %v1707_v38  ;;  %v1733_v37 = vld [vmem:[%s2562_s1 + $0x14] ss:$36 sps:$4 sm:$0xff]   ;;  %v1736_v38 = vld [vmem:[%s2562_s1 + $0x1c] ss:$36 sps:$4 sm:$0xff]   ;;  %v1763_v63 = vld [vmem:[%s2562_s1 + $0x184] ss:$36 sps:$4 sm:$0xff]  }
  0x41   :  { %968 = vmatprep.mubr.bf16.mxu1 %v1709_v42  ;;  %1534 = vmatpush3.bf16.msra.mxu0 %v314_v60  ;;  %v275_v42 = vmax.f32 %v143_v40, 0.0  ;;  %v1755_v58 = vld [vmem:[%s2562_s1 + $0x134] ss:$36 sps:$4 sm:$0xff]   ;;  %v1761_v62 = vld [vmem:[%s2562_s1 + $0x17c] ss:$36 sps:$4 sm:$0xff]  }
  0x42   :  { %1598 = vmatpush3.bf16.msra.mxu1 %v330_v61  ;;  %1535 = vmatprep.subr.bf16.mxu0 %v323_v13  ;;  %v1759_v60 = vld [vmem:[%s2562_s1 + $0x130] ss:$36 sps:$4 sm:$0xff]   ;;  %v1760_v61 = vld [vmem:[%s2562_s1 + $0x138] ss:$36 sps:$4 sm:$0xff]   ;;  %v1766_v1 = vld [vmem:[%s2562_s1 + $0x180] ss:$36 sps:$4 sm:$0xff]  }
  0x43   :  { %1599 = vmatprep.subr.bf16.mxu1 %v339_v18  ;;  %v341_v47 = vpack.c.bf16 %v275_v42, %v274_v41  ;;  %v1767_v2 = vld [vmem:[%s2562_s1 + $0x1c4] ss:$36 sps:$4 sm:$0xff]   ;;  %v1769_v3 = vld [vmem:[%s2562_s1 + $0x1cc] ss:$36 sps:$4 sm:$0xff]   ;;  %v1775_v7 = vld [vmem:[%s2562_s1 + $0x214] ss:$36 sps:$4 sm:$0xff]  }
  0x44   :  { %v1771_v4 = vld [vmem:[%s2562_s1 + $0x1c0] ss:$36 sps:$4 sm:$0xff]   ;;  %v1772_v5 = vld [vmem:[%s2562_s1 + $0x1c8] ss:$36 sps:$4 sm:$0xff]   ;;  %v1778_v9 = vld [vmem:[%s2562_s1 + $0x210] ss:$36 sps:$4 sm:$0xff]  }
  0x45   :  { %1536 = vmatpush3.bf16.msra.mxu0 %v315_v19  ;;  %v1773_v6 = vld [vmem:[%s2562_s1 + $0x20c] ss:$36 sps:$4 sm:$0xff]   ;;  %v1779_v10 = vld [vmem:[%s2562_s1 + $0x20] ss:$36 sps:$4 sm:$0xff]  }
  0x46   :  { %1600 = vmatpush3.bf16.msra.mxu1 %v331_v21  ;;  %1659 = vmatprep.subr.bf16.mxu0 %v340_v26  ;;  %v1777_v8 = vld [vmem:[%s2562_s1 + $0x208] ss:$36 sps:$4 sm:$0xff]   ;;  %v1780_v11 = vld [vmem:[%s2562_s1 + $0x140] ss:$36 sps:$4 sm:$0xff]   ;;  %v1783_v14 = vld [vmem:[%s2562_s1 + $0xb0] ss:$36 sps:$4 sm:$0xff]  }
  0x47   :  { %872 = vmatmul.mubr.bf16.gmra.mrb[16].mxu0 %v1711_v12  ;;  %1679 = vmatprep.subr.bf16.mxu1 %v340_v26  ;;  %v1781_v12 = vld [vmem:[%s2562_s1 + $0x68] ss:$36 sps:$4 sm:$0xff]   ;;  %v1784_v15 = vld [vmem:[%s2562_s1 + $0x1d0] ss:$36 sps:$4 sm:$0xff]  }
  0x48   :  { %969 = vmatmul.mubr.bf16.gmra.mrb[16].mxu1 %v1712_v16  ;;  %879 = vmatprep.mubr.bf16.mxu0 %v1713_v17  ;;  %v1782_v13 = vld [vmem:[%s2562_s1 + $0x188] ss:$36 sps:$4 sm:$0xff]   ;;  %v1785_v16 = vld [vmem:[%s2562_s1 + $0xf8] ss:$36 sps:$4 sm:$0xff]  }
  0x49   :  { %976 = vmatprep.mubr.bf16.mxu1 %v1715_v20  ;;  %v1786_v17 = vld [vmem:[%s2562_s1 + $0x218] ss:$36 sps:$4 sm:$0xff]  }
  0x4f   :  { %880 = vmatmul.mubr.bf16.gmra.mrb[20].mxu0 %v1717_v27 }
  0x50   :  { %977 = vmatmul.mubr.bf16.gmra.mrb[20].mxu1 %v1718_v28  ;;  %887 = vmatprep.mubr.bf16.mxu0 %v1719_v29 }
  0x51   :  { %984 = vmatprep.mubr.bf16.mxu1 %v1721_v30 }
  0x57   :  { %888 = vmatmul.mubr.bf16.gmra.mrb[24].mxu0 %v1723_v31 }
  0x58   :  { %985 = vmatmul.mubr.bf16.gmra.mrb[24].mxu1 %v1724_v32  ;;  %895 = vmatprep.mubr.bf16.mxu0 %v1725_v33 }
  0x59   :  { %992 = vmatprep.mubr.bf16.mxu1 %v1727_v34 }
  0x5f   :  { %896 = vmatmul.mubr.bf16.gmra.mrb[28].mxu0 %v1729_v35 }
  0x60   :  { %993 = vmatmul.mubr.bf16.gmra.mrb[28].mxu1 %v1730_v36  ;;  %1033 = vmatprep.mubr.bf16.mxu0 %v1733_v37 }
  0x61   :  { %1130 = vmatprep.mubr.bf16.mxu1 %v1736_v38 }
  0x67   :  { %1034 = vmatmul.mubr.bf16.vlgmr.msra.gmra.mrb[32].mxu0 %v1731_v43 }
  0x68   :  { %1131 = vmatmul.mubr.bf16.vlgmr.msra.gmra.mrb[32].mxu1 %v1734_v44  ;;  %1660 = vmatpush3.bf16.msra.mxu0 %v340_v26 }
  0x69   :  { %1681 = vmatpush3.bf16.msra.mxu1 %v340_v26  ;;  %1041 = vmatprep.mubr.bf16.mxu0 %v1737_v45 }
  0x6a   :  { %1138 = vmatprep.mubr.bf16.mxu1 %v1739_v46  ;;  %1661 = vmatprep.subr.bf16.mxu0 %v341_v47 }
  0x6b   :  { %1680 = vmatprep.subr.bf16.mxu1 %v341_v47 }
  0x6c   :  { %1662 = vmatpush3.bf16.msra.mxu0 %v341_v47 }
  0x6d   :  { %1682 = vmatpush3.bf16.msra.mxu1 %v341_v47 }
  0x6f   :  { %1042 = vmatmul.mubr.bf16.gmra.mrb[36].mxu0 %v1741_v48 }
  0x70   :  { %1139 = vmatmul.mubr.bf16.gmra.mrb[36].mxu1 %v1742_v49  ;;  %1049 = vmatprep.mubr.bf16.mxu0 %v1743_v50 }
  0x71   :  { %1146 = vmatprep.mubr.bf16.mxu1 %v1745_v51 }
  0x77   :  { %1050 = vmatmul.mubr.bf16.gmra.mrb[40].mxu0 %v1747_v52 }
  0x78   :  { %1147 = vmatmul.mubr.bf16.gmra.mrb[40].mxu1 %v1748_v53  ;;  %1057 = vmatprep.mubr.bf16.mxu0 %v1749_v54 }
  0x79   :  { %1154 = vmatprep.mubr.bf16.mxu1 %v1751_v55 }
  0x7f   :  { %1058 = vmatmul.mubr.bf16.gmra.mrb[44].mxu0 %v1753_v56 }
  0x80   :  { %1155 = vmatmul.mubr.bf16.gmra.mrb[44].mxu1 %v1754_v57  ;;  %1065 = vmatprep.mubr.bf16.mxu0 %v1755_v58 }
  0x81   :  { %1162 = vmatprep.mubr.bf16.mxu1 %v1757_v59 }
  0x87   :  { %1066 = vmatmul.mubr.bf16.gmra.mrb[48].mxu0 %v1759_v60 }
  0x88   :  { %1163 = vmatmul.mubr.bf16.gmra.mrb[48].mxu1 %v1760_v61  ;;  %1073 = vmatprep.mubr.bf16.mxu0 %v1761_v62 }
  0x89   :  { %1170 = vmatprep.mubr.bf16.mxu1 %v1763_v63 }
  0x8f   :  { %1074 = vmatmul.mubr.bf16.gmra.mrb[52].mxu0 %v1765_v0 }
  0x90   :  { %1171 = vmatmul.mubr.bf16.gmra.mrb[52].mxu1 %v1766_v1  ;;  %1081 = vmatprep.mubr.bf16.mxu0 %v1767_v2 }
  0x91   :  { %1178 = vmatprep.mubr.bf16.mxu1 %v1769_v3 }
  0x97   :  { %1082 = vmatmul.mubr.bf16.gmra.mrb[56].mxu0 %v1771_v4 }
  0x98   :  { %1179 = vmatmul.mubr.bf16.gmra.mrb[56].mxu1 %v1772_v5  ;;  %1089 = vmatprep.mubr.bf16.mxu0 %v1773_v6 }
  0x99   :  { %1186 = vmatprep.mubr.bf16.mxu1 %v1775_v7 }
  0x9f   :  { %1090 = vmatmul.mubr.bf16.gmra.mrb[60].mxu0 %v1777_v8 }
  0xa0   :  { %1187 = vmatmul.mubr.bf16.gmra.mrb[60].mxu1 %v1778_v9  ;;  %1663 = vmatprep.mubr.msk.bf16.mxu0 %vm782_vm0, %v1779_v10 }
  0xa1   :  { %1671 = vmatprep.mubr.msk.bf16.mxu1 %vm782_vm0, %v1780_v11 }
  0xa7   :  { %1664 = vmatmul.mubr.msk.bf16.vlgmr.msra.gmra.mrb[64].mxu0 %vm782_vm0, %v1781_v12 }
  0xa8   :  { %1672 = vmatmul.mubr.msk.bf16.vlgmr.msra.gmra.mrb[64].mxu1 %vm782_vm0, %v1782_v13  ;;  %1667 = vmatprep.mubr.msk.bf16.mxu0 %vm782_vm0, %v1783_v14 }
  0xa9   :  { %1675 = vmatprep.mubr.msk.bf16.mxu1 %vm782_vm0, %v1784_v15 }
  0xaf   :  { %1668 = vmatmul.mubr.msk.bf16.gmra.mrb[68].mxu0 %vm782_vm0, %v1785_v16 }
  0xb0   :  { %1676 = vmatmul.mubr.msk.bf16.gmra.mrb[68].mxu1 %vm782_vm0, %v1786_v17 }
  0xfa   :  { %v1409_v18 = vpop.f32.mrb[0].mxu0 }
  0xfb   :  { %v1473_v19 = vpop.f32.mrb[0].mxu1  ;;  %v1410_v20 = vpop.f32.mrb[1].mxu0 }
  0xfc   :  { %v1411_v21 = vadd.f32 %v1410_v20, %v1409_v18  ;;  %v1474_v22 = vpop.f32.mrb[1].mxu1  ;;  %v1412_v23 = vpop.f32.mrb[2].mxu0 }
  0xfd   :  { %v1475_v24 = vadd.f32 %v1474_v22, %v1473_v19  ;;  %v1476_v25 = vpop.f32.mrb[2].mxu1  ;;  %v1413_v26 = vpop.f32.mrb[3].mxu0 }
  0xfe   :  { %v1414_v27 = vadd.f32 %v1413_v26, %v1412_v23  ;;  %v1477_v28 = vpop.f32.mrb[3].mxu1 }
  0xff   :  { %v2422_v29 = vadd.f32 %v1475_v24, %v1411_v21  ;;  %v1478_v30 = vadd.f32 %v1477_v28, %v1476_v25 }
 0x101   :  { %v2424_v31 = vadd.f32 %v1478_v30, %v1414_v27 }
 0x102   :  { %v1415_v32 = vpop.f32.mrb[4].mxu0 }
 0x103   :  { %v1479_v33 = vpop.f32.mrb[4].mxu1  ;;  %v1416_v34 = vpop.f32.mrb[5].mxu0 }
 0x104   :  { %v1417_v35 = vadd.f32 %v1416_v34, %v1415_v32  ;;  %v1480_v36 = vpop.f32.mrb[5].mxu1  ;;  %v1418_v37 = vpop.f32.mrb[6].mxu0 }
 0x105   :  { %v1481_v38 = vadd.f32 %v1480_v36, %v1479_v33  ;;  %v1482_v39 = vpop.f32.mrb[6].mxu1  ;;  %v1419_v40 = vpop.f32.mrb[7].mxu0 }
 0x106   :  { %v1420_v41 = vadd.f32 %v1419_v40, %v1418_v37  ;;  %v1483_v42 = vpop.f32.mrb[7].mxu1 }
 0x107   :  { %v2426_v43 = vadd.f32 %v1481_v38, %v1417_v35  ;;  %v1484_v44 = vadd.f32 %v1483_v42, %v1482_v39 }
 0x109   :  { %v2428_v45 = vadd.f32 %v1484_v44, %v1420_v41 }
 0x10a   :  { %v1421_v46 = vpop.f32.mrb[8].mxu0 }
 0x10b   :  { %v1485_v47 = vpop.f32.mrb[8].mxu1  ;;  %v1422_v48 = vpop.f32.mrb[9].mxu0 }
 0x10c   :  { %v1423_v49 = vadd.f32 %v1422_v48, %v1421_v46  ;;  %v1486_v50 = vpop.f32.mrb[9].mxu1  ;;  %v1424_v51 = vpop.f32.mrb[10].mxu0 }
 0x10d   :  { %v1487_v52 = vadd.f32 %v1486_v50, %v1485_v47  ;;  %v1488_v53 = vpop.f32.mrb[10].mxu1  ;;  %v1425_v54 = vpop.f32.mrb[11].mxu0 }
 0x10e   :  { %v1426_v55 = vadd.f32 %v1425_v54, %v1424_v51  ;;  %v1489_v56 = vpop.f32.mrb[11].mxu1 }
 0x10f   :  { %v2430_v57 = vadd.f32 %v1487_v52, %v1423_v49  ;;  %v1490_v58 = vadd.f32 %v1489_v56, %v1488_v53 }
 0x111   :  { %v2432_v59 = vadd.f32 %v1490_v58, %v1426_v55 }
 0x112   :  { %v1427_v60 = vpop.f32.mrb[12].mxu0 }
 0x113   :  { %v1491_v61 = vpop.f32.mrb[12].mxu1  ;;  %v1428_v62 = vpop.f32.mrb[13].mxu0 }
 0x114   :  { %v1429_v63 = vadd.f32 %v1428_v62, %v1427_v60  ;;  %v1492_v0 = vpop.f32.mrb[13].mxu1  ;;  %v1430_v1 = vpop.f32.mrb[14].mxu0 }
 0x115   :  { %v1493_v2 = vadd.f32 %v1492_v0, %v1491_v61  ;;  %v1494_v3 = vpop.f32.mrb[14].mxu1  ;;  %v1431_v4 = vpop.f32.mrb[15].mxu0 }
 0x116   :  { %v1432_v5 = vadd.f32 %v1431_v4, %v1430_v1  ;;  %v1495_v6 = vpop.f32.mrb[15].mxu1 }
 0x117   :  { %v2434_v7 = vadd.f32 %v1493_v2, %v1429_v63  ;;  %v1496_v8 = vadd.f32 %v1495_v6, %v1494_v3 }
 0x119   :  { %v2436_v9 = vadd.f32 %v1496_v8, %v1432_v5 }
 0x11a   :  { %v1433_v10 = vpop.f32.mrb[16].mxu0 }
 0x11b   :  { %v1497_v11 = vpop.f32.mrb[16].mxu1  ;;  %v1434_v12 = vpop.f32.mrb[17].mxu0 }
 0x11c   :  { %v1435_v13 = vadd.f32 %v1434_v12, %v1433_v10  ;;  %v1498_v14 = vpop.f32.mrb[17].mxu1  ;;  %v1436_v15 = vpop.f32.mrb[18].mxu0 }
 0x11d   :  { %v1499_v16 = vadd.f32 %v1498_v14, %v1497_v11  ;;  %v1500_v17 = vpop.f32.mrb[18].mxu1  ;;  %v1437_v18 = vpop.f32.mrb[19].mxu0 }
 0x11e   :  { %v1438_v19 = vadd.f32 %v1437_v18, %v1436_v15  ;;  %v1501_v20 = vpop.f32.mrb[19].mxu1 }
 0x11f   :  { %v2438_v21 = vadd.f32 %v1499_v16, %v1435_v13  ;;  %v1502_v22 = vadd.f32 %v1501_v20, %v1500_v17 }
 0x121   :  { %v2440_v23 = vadd.f32 %v1502_v22, %v1438_v19 }
 0x122   :  { %v1439_v24 = vpop.f32.mrb[20].mxu0 }
 0x123   :  { %v1503_v25 = vpop.f32.mrb[20].mxu1  ;;  %v1440_v26 = vpop.f32.mrb[21].mxu0 }
 0x124   :  { %v1441_v27 = vadd.f32 %v1440_v26, %v1439_v24  ;;  %v1504_v28 = vpop.f32.mrb[21].mxu1  ;;  %v1442_v30 = vpop.f32.mrb[22].mxu0 }
 0x125   :  { %v1505_v32 = vadd.f32 %v1504_v28, %v1503_v25  ;;  %v1506_v33 = vpop.f32.mrb[22].mxu1  ;;  %v1443_v34 = vpop.f32.mrb[23].mxu0 }
 0x126   :  { %v1444_v35 = vadd.f32 %v1443_v34, %v1442_v30  ;;  %v1507_v36 = vpop.f32.mrb[23].mxu1 }
 0x127   :  { %v2442_v37 = vadd.f32 %v1505_v32, %v1441_v27  ;;  %v1508_v38 = vadd.f32 %v1507_v36, %v1506_v33 }
 0x129   :  { %v2444_v39 = vadd.f32 %v1508_v38, %v1444_v35 }
 0x12a   :  { %v1445_v40 = vpop.f32.mrb[24].mxu0 }
 0x12b   :  { %v1509_v41 = vpop.f32.mrb[24].mxu1  ;;  %v1446_v42 = vpop.f32.mrb[25].mxu0 }
 0x12c   :  { %v1447_v44 = vadd.f32 %v1446_v42, %v1445_v40  ;;  %v1510_v46 = vpop.f32.mrb[25].mxu1  ;;  %v1448_v47 = vpop.f32.mrb[26].mxu0 }
 0x12d   :  { %v1511_v48 = vadd.f32 %v1510_v46, %v1509_v41  ;;  %v1512_v49 = vpop.f32.mrb[26].mxu1  ;;  %v1449_v50 = vpop.f32.mrb[27].mxu0 }
 0x12e   :  { %v1450_v51 = vadd.f32 %v1449_v50, %v1448_v47  ;;  %v1513_v52 = vpop.f32.mrb[27].mxu1 }
 0x12f   :  { %v2446_v53 = vadd.f32 %v1511_v48, %v1447_v44  ;;  %v1514_v54 = vadd.f32 %v1513_v52, %v1512_v49 }
 0x131   :  { %v2448_v55 = vadd.f32 %v1514_v54, %v1450_v51 }
 0x132   :  { %v1451_v56 = vpop.f32.mrb[28].mxu0 }
 0x133   :  { %v1515_v58 = vpop.f32.mrb[28].mxu1  ;;  %v1452_v60 = vpop.f32.mrb[29].mxu0 }
 0x134   :  { %v1453_v61 = vadd.f32 %v1452_v60, %v1451_v56  ;;  %v1516_v62 = vpop.f32.mrb[29].mxu1  ;;  %v1454_v63 = vpop.f32.mrb[30].mxu0 }
 0x135   :  { %v1517_v0 = vadd.f32 %v1516_v62, %v1515_v58  ;;  %v1518_v1 = vpop.f32.mrb[30].mxu1  ;;  %v1455_v2 = vpop.f32.mrb[31].mxu0 }
 0x136   :  { %v1456_v3 = vadd.f32 %v1455_v2, %v1454_v63  ;;  %v1519_v4 = vpop.f32.mrb[31].mxu1 }
 0x137   :  { %v2450_v5 = vadd.f32 %v1517_v0, %v1453_v61  ;;  %v1520_v6 = vadd.f32 %v1519_v4, %v1518_v1 }
 0x139   :  { %v2452_v8 = vadd.f32 %v1520_v6, %v1456_v3 }
 0x13a   :  { %v1537_v10 = vpop.f32.mrb[32].mxu0 }
 0x13b   :  { %v1601_v11 = vpop.f32.mrb[32].mxu1  ;;  %v1538_v12 = vpop.f32.mrb[33].mxu0 }
 0x13c   :  { %v1539_v13 = vadd.f32 %v1538_v12, %v1537_v10  ;;  %v1602_v14 = vpop.f32.mrb[33].mxu1  ;;  %v1540_v15 = vpop.f32.mrb[34].mxu0 }
 0x13d   :  { %v1603_v16 = vadd.f32 %v1602_v14, %v1601_v11  ;;  %v1604_v17 = vpop.f32.mrb[34].mxu1  ;;  %v1541_v18 = vpop.f32.mrb[35].mxu0 }
 0x13e   :  { %v1036_v19 = vadd.f32 %v1539_v13, %v2422_v29  ;;  %v1542_v20 = vadd.f32 %v1541_v18, %v1540_v15  ;;  %v1605_v22 = vpop.f32.mrb[35].mxu1 }
 0x13f   :  { %v1606_v24 = vadd.f32 %v1605_v22, %v1604_v17 }
 0x140   :  { %v1039_v25 = vadd.f32 %v1542_v20, %v2424_v31  ;;  %v2456_v26 = vadd.f32 %v1603_v16, %v1036_v19 }
 0x142   :  { %v1543_v27 = vpop.f32.mrb[36].mxu0  ;;  %v2458_v28 = vadd.f32 %v1606_v24, %v1039_v25 }
 0x143   :  { %v1607_v30 = vpop.f32.mrb[36].mxu1  ;;  %v1544_v32 = vpop.f32.mrb[37].mxu0 }
 0x144   :  { %v1545_v33 = vadd.f32 %v1544_v32, %v1543_v27  ;;  %v1608_v34 = vpop.f32.mrb[37].mxu1  ;;  %v1546_v35 = vpop.f32.mrb[38].mxu0 }
 0x145   :  { %v1609_v36 = vadd.f32 %v1608_v34, %v1607_v30  ;;  %v1610_v38 = vpop.f32.mrb[38].mxu1  ;;  %v1547_v40 = vpop.f32.mrb[39].mxu0 }
 0x146   :  { %v1044_v29 = vadd.f32 %v1545_v33, %v2426_v43  ;;  %v1548_v41 = vadd.f32 %v1547_v40, %v1546_v35  ;;  %v1611_v42 = vpop.f32.mrb[39].mxu1 }
 0x147   :  { %v1612_v44 = vadd.f32 %v1611_v42, %v1610_v38 }
 0x148   :  { %v1047_v31 = vadd.f32 %v1548_v41, %v2428_v45  ;;  %v2462_v46 = vadd.f32 %v1609_v36, %v1044_v29 }
 0x14a   :  { %v1549_v47 = vpop.f32.mrb[40].mxu0  ;;  %v2464_v48 = vadd.f32 %v1612_v44, %v1047_v31 }
 0x14b   :  { %v1613_v49 = vpop.f32.mrb[40].mxu1  ;;  %v1550_v50 = vpop.f32.mrb[41].mxu0 }
 0x14c   :  { %v1551_v51 = vadd.f32 %v1550_v50, %v1549_v47  ;;  %v1614_v52 = vpop.f32.mrb[41].mxu1  ;;  %v1552_v54 = vpop.f32.mrb[42].mxu0 }
 0x14d   :  { %v1615_v56 = vadd.f32 %v1614_v52, %v1613_v49  ;;  %v1616_v58 = vpop.f32.mrb[42].mxu1  ;;  %v1553_v60 = vpop.f32.mrb[43].mxu0 }
 0x14e   :  { %v1052_v43 = vadd.f32 %v1551_v51, %v2430_v57  ;;  %v1554_v61 = vadd.f32 %v1553_v60, %v1552_v54  ;;  %v1617_v62 = vpop.f32.mrb[43].mxu1 }
 0x14f   :  { %v1618_v63 = vadd.f32 %v1617_v62, %v1616_v58 }
 0x150   :  { %v1055_v45 = vadd.f32 %v1554_v61, %v2432_v59  ;;  %v2468_v0 = vadd.f32 %v1615_v56, %v1052_v43 }
 0x152   :  { %v1555_v1 = vpop.f32.mrb[44].mxu0  ;;  %v2470_v2 = vadd.f32 %v1618_v63, %v1055_v45 }
 0x153   :  { %v1619_v3 = vpop.f32.mrb[44].mxu1  ;;  %v1556_v4 = vpop.f32.mrb[45].mxu0 }
 0x154   :  { %v1557_v6 = vadd.f32 %v1556_v4, %v1555_v1  ;;  %v1620_v10 = vpop.f32.mrb[45].mxu1  ;;  %v1558_v11 = vpop.f32.mrb[46].mxu0 }
 0x155   :  { %v1621_v12 = vadd.f32 %v1620_v10, %v1619_v3  ;;  %v1622_v13 = vpop.f32.mrb[46].mxu1  ;;  %v1559_v14 = vpop.f32.mrb[47].mxu0 }
 0x156   :  { %v1060_v57 = vadd.f32 %v1557_v6, %v2434_v7  ;;  %v1560_v15 = vadd.f32 %v1559_v14, %v1558_v11  ;;  %v1623_v16 = vpop.f32.mrb[47].mxu1 }
 0x157   :  { %v1624_v17 = vadd.f32 %v1623_v16, %v1622_v13 }
 0x158   :  { %v1063_v59 = vadd.f32 %v1560_v15, %v2436_v9  ;;  %v2474_v18 = vadd.f32 %v1621_v12, %v1060_v57 }
 0x15a   :  { %v1561_v19 = vpop.f32.mrb[48].mxu0  ;;  %v2476_v20 = vadd.f32 %v1624_v17, %v1063_v59 }
 0x15b   :  { %v1625_v22 = vpop.f32.mrb[48].mxu1  ;;  %v1562_v24 = vpop.f32.mrb[49].mxu0 }
 0x15c   :  { %v1563_v25 = vadd.f32 %v1562_v24, %v1561_v19  ;;  %v1626_v27 = vpop.f32.mrb[49].mxu1  ;;  %v1564_v30 = vpop.f32.mrb[50].mxu0 }
 0x15d   :  { %v1627_v32 = vadd.f32 %v1626_v27, %v1625_v22  ;;  %v1628_v33 = vpop.f32.mrb[50].mxu1  ;;  %v1565_v34 = vpop.f32.mrb[51].mxu0 }
 0x15e   :  { %v1068_v7 = vadd.f32 %v1563_v25, %v2438_v21  ;;  %v1566_v35 = vadd.f32 %v1565_v34, %v1564_v30  ;;  %v1629_v36 = vpop.f32.mrb[51].mxu1 }
 0x15f   :  { %v1630_v38 = vadd.f32 %v1629_v36, %v1628_v33 }
 0x160   :  { %v1071_v9 = vadd.f32 %v1566_v35, %v2440_v23  ;;  %v1165_v40 = vadd.f32 %v1627_v32, %v1068_v7 }
 0x162   :  { %v1567_v29 = vpop.f32.mrb[52].mxu0  ;;  %v2480_v41 = vadd.f32 %v1630_v38, %v1071_v9 }
 0x163   :  { %v1631_v42 = vpop.f32.mrb[52].mxu1  ;;  %v1568_v44 = vpop.f32.mrb[53].mxu0 }
 0x164   :  { %v1569_v31 = vadd.f32 %v1568_v44, %v1567_v29  ;;  %v1632_v47 = vpop.f32.mrb[53].mxu1  ;;  %v1570_v49 = vpop.f32.mrb[54].mxu0 }
 0x165   :  { %v1633_v50 = vadd.f32 %v1632_v47, %v1631_v42  ;;  %v1634_v51 = vpop.f32.mrb[54].mxu1  ;;  %v1571_v52 = vpop.f32.mrb[55].mxu0 }
 0x166   :  { %v1076_v54 = vadd.f32 %v1569_v31, %v2442_v37  ;;  %v1572_v21 = vadd.f32 %v1571_v52, %v1570_v49  ;;  %v1635_v56 = vpop.f32.mrb[55].mxu1 }
 0x167   :  { %v1636_v58 = vadd.f32 %v1635_v56, %v1634_v51 }
 0x168   :  { %v1079_v60 = vadd.f32 %v1572_v21, %v2444_v39  ;;  %v1173_v23 = vadd.f32 %v1633_v50, %v1076_v54 }
 0x16a   :  { %v1573_v43 = vpop.f32.mrb[56].mxu0  ;;  %v1176_v61 = vadd.f32 %v1636_v58, %v1079_v60 }
 0x16b   :  { %v1637_v62 = vpop.f32.mrb[56].mxu1  ;;  %v1574_v63 = vpop.f32.mrb[57].mxu0 }
 0x16c   :  { %v1575_v45 = vadd.f32 %v1574_v63, %v1573_v43  ;;  %v1638_v1 = vpop.f32.mrb[57].mxu1  ;;  %v1576_v3 = vpop.f32.mrb[58].mxu0 }
 0x16d   :  { %v1639_v4 = vadd.f32 %v1638_v1, %v1637_v62  ;;  %v1640_v6 = vpop.f32.mrb[58].mxu1  ;;  %v1577_v10 = vpop.f32.mrb[59].mxu0 }
 0x16e   :  { %v1084_v11 = vadd.f32 %v1575_v45, %v2446_v53  ;;  %v1578_v12 = vadd.f32 %v1577_v10, %v1576_v3  ;;  %v1641_v37 = vpop.f32.mrb[59].mxu1 }
 0x16f   :  { %v1642_v13 = vadd.f32 %v1641_v37, %v1640_v6 }
 0x170   :  { %v1087_v14 = vadd.f32 %v1578_v12, %v2448_v55  ;;  %v1181_v57 = vadd.f32 %v1639_v4, %v1084_v11 }
 0x172   :  { %v1579_v39 = vpop.f32.mrb[60].mxu0  ;;  %v1184_v15 = vadd.f32 %v1642_v13, %v1087_v14 }
 0x173   :  { %v1643_v16 = vpop.f32.mrb[60].mxu1  ;;  %v1580_v17 = vpop.f32.mrb[61].mxu0 }
 0x174   :  { %v1581_v59 = vadd.f32 %v1580_v17, %v1579_v39  ;;  %v1644_v19 = vpop.f32.mrb[61].mxu1  ;;  %v1582_v22 = vpop.f32.mrb[62].mxu0 }
 0x175   :  { %v1645_v24 = vadd.f32 %v1644_v19, %v1643_v16  ;;  %v1646_v25 = vpop.f32.mrb[62].mxu1  ;;  %v1583_v27 = vpop.f32.mrb[63].mxu0 }
 0x176   :  { %v1092_v30 = vadd.f32 %v1581_v59, %v2450_v5  ;;  %v1584_v32 = vadd.f32 %v1583_v27, %v1582_v22  ;;  %v1647_v53 = vpop.f32.mrb[63].mxu1 }
 0x177   :  { %v1648_v33 = vadd.f32 %v1647_v53, %v1646_v25 }
 0x178   :  { %v1095_v34 = vadd.f32 %v1584_v32, %v2452_v8  ;;  %v1189_v7 = vadd.f32 %v1645_v24, %v1092_v30 }
 0x17a   :  { %v1665_v55 = vpop.f32.mrb[64].mxu0  ;;  %v1192_v35 = vadd.f32 %v1648_v33, %v1095_v34 }
 0x17b   :  { %v1238_v36 = vadd.f32 %v1665_v55, %v2462_v46  ;;  %v1673_v38 = vpop.f32.mrb[64].mxu1  ;;  %v1229_v9 = vpop.f32.mrb[65].mxu0 }
 0x17c   :  { %v1270_v29 = vadd.f32 %v1673_v38, %v1173_v23  ;;  %v1230_v42 = vadd.f32 %v1229_v9, %v2456_v26  ;;  %v1261_v44 = vpop.f32.mrb[65].mxu1  ;;  %v1666_v31 = vpop.f32.mrb[66].mxu0 }
 0x17d   :  { %1295 = vst.msk [vmem:[%s2563_s2 + $0x10] sm:$0xff] %vm1292_vm1, %v1238_v36  ;;  %v1262_v5 = vadd.f32 %v1261_v44, %v1165_v40  ;;  %v1241_v8 = vadd.f32 %v1666_v31, %v2464_v48  ;;  %v1674_v47 = vpop.f32.mrb[66].mxu1  ;;  %v1232_v49 = vpop.f32.mrb[67].mxu0 }
 0x17e   :  { %1303 = vst.msk [vmem:[%s2563_s2 + $0x50] sm:$0xff] %vm1292_vm1, %v1270_v29  ;;  %1293 = vst.msk [vmem:[%s2563_s2] sm:$0xff] %vm1292_vm1, %v1230_v42  ;;  %v1273_v26 = vadd.f32 %v1674_v47, %v1176_v61  ;;  %v1233_v46 = vadd.f32 %v1232_v49, %v2458_v28  ;;  %v1264_v50 = vpop.f32.mrb[67].mxu1 }
 0x17f   :  { %1301 = vst.msk [vmem:[%s2563_s2 + $0x40] sm:$0xff] %vm1292_vm1, %v1262_v5  ;;  %1296 = vst.msk [vmem:[%s2563_s2 + $0x18] sm:$0xff] %vm1292_vm1, %v1241_v8  ;;  %v1265_v48 = vadd.f32 %v1264_v50, %v2480_v41 }
 0x180   :  { %1304 = vst.msk [vmem:[%s2563_s2 + $0x58] sm:$0xff] %vm1292_vm1, %v1273_v26  ;;  %1294 = vst.msk [vmem:[%s2563_s2 + $0x8] sm:$0xff] %vm1292_vm1, %v1233_v46 }
 0x181   :  { %1302 = vst.msk [vmem:[%s2563_s2 + $0x48] sm:$0xff] %vm1292_vm1, %v1265_v48 }
 0x182   :  { %v1669_v28 = vpop.f32.mrb[68].mxu0 }
 0x183   :  { %v1254_v40 = vadd.f32 %v1669_v28, %v2474_v18  ;;  %v1677_v51 = vpop.f32.mrb[68].mxu1  ;;  %v1245_v41 = vpop.f32.mrb[69].mxu0 }
 0x184   :  { %v1286_v52 = vadd.f32 %v1677_v51, %v1189_v7  ;;  %v1246_v54 = vadd.f32 %v1245_v41, %v2468_v0  ;;  %v1277_v21 = vpop.f32.mrb[69].mxu1  ;;  %v1670_v56 = vpop.f32.mrb[70].mxu0 }
 0x185   :  { %1299 = vst.msk [vmem:[%s2563_s2 + $0x30] sm:$0xff] %vm1292_vm1, %v1254_v40  ;;  %v1278_v58 = vadd.f32 %v1277_v21, %v1181_v57  ;;  %v1257_v60 = vadd.f32 %v1670_v56, %v2476_v20  ;;  %v1678_v23 = vpop.f32.mrb[70].mxu1  ;;  %v1248_v43 = vpop.f32.mrb[71].mxu0 }
 0x186   :  { %1307 = vst.msk [vmem:[%s2563_s2 + $0x70] sm:$0xff] %vm1292_vm1, %v1286_v52  ;;  %1297 = vst.msk [vmem:[%s2563_s2 + $0x20] sm:$0xff] %vm1292_vm1, %v1246_v54  ;;  %v1289_v0 = vadd.f32 %v1678_v23, %v1192_v35  ;;  %v1249_v18 = vadd.f32 %v1248_v43, %v2470_v2  ;;  %v1280_v61 = vpop.f32.mrb[71].mxu1 }
 0x187   :  { %1305 = vst.msk [vmem:[%s2563_s2 + $0x60] sm:$0xff] %vm1292_vm1, %v1278_v58  ;;  %1300 = vst.msk [vmem:[%s2563_s2 + $0x38] sm:$0xff] %vm1292_vm1, %v1257_v60  ;;  %v1281_v20 = vadd.f32 %v1280_v61, %v1184_v15 }
 0x188   :  { %1308 = vst.msk [vmem:[%s2563_s2 + $0x78] sm:$0xff] %vm1292_vm1, %v1289_v0  ;;  %1298 = vst.msk [vmem:[%s2563_s2 + $0x28] sm:$0xff] %vm1292_vm1, %v1249_v18 }
 0x189   :  { %1306 = vst.msk [vmem:[%s2563_s2 + $0x68] sm:$0xff] %vm1292_vm1, %v1281_v20 }

</bundles_post_ra>
